<compile_context>
chip_gen: v5e
topology: v5e:2x2
jax: 0.10.0
libtpu: 0.0.40
codegen_flags: <defaults>
</compile_context>

<pallas_src>
import jax
import jax.numpy as jnp
from jax import lax
from jax.experimental import pallas as pl
from jax.experimental.pallas import tpu as pltpu


def _round_up(n: int, m: int) -> int:
    return ((n + m - 1) // m) * m


def dqn_kernel(x_ref, w1_ref, b1_ref, w2_ref, b2_ref, w3_ref, b3_ref, o_ref):
    """Fused fc1+relu, fc2+relu, fc3 on one (TILE_B, state_size) batch tile.

    x_ref:  (TILE_B, state_size)    states in native PyTorch layout
    w1_ref: (hidden, state_size)    PyTorch-native (out_features, in_features)
    b1_ref: (hidden, 1)             f32
    w2_ref: (hidden, hidden)
    b2_ref: (hidden, 1)             f32
    w3_ref: (action_size, hidden)
    b3_ref: (1, action_size)        f32 (broadcast over batch rows)
    o_ref:  (TILE_B, action_size)   f32 Q-values, native layout
    """
    x = x_ref[...]
    cdt = x.dtype  # compute dtype follows the stored states (f32 or bf16)

    # fc1: contract the shared state axis -> lane-dense (hidden, TILE_B), batch on lanes.
    h1 = lax.dot_general(w1_ref[...], x, (((1,), (1,)), ((), ())),
                         preferred_element_type=jnp.float32)
    h1 = jnp.maximum(h1 + b1_ref[...], 0.0)          # f32 epilogue (v5e-safe)
    h1c = h1 if cdt == jnp.float32 else h1.astype(cdt)

    # fc2: standard (hidden, hidden) @ (hidden, TILE_B).
    h2 = jnp.dot(w2_ref[...], h1c, preferred_element_type=jnp.float32)
    h2 = jnp.maximum(h2 + b2_ref[...], 0.0)
    h2c = h2 if cdt == jnp.float32 else h2.astype(cdt)

    # fc3: contract the hidden (sublane) axis of h2 so the result lands natively as
    # (TILE_B, action_size); the reorientation stays in-VMEM (XLU), never touches HBM.
    q = lax.dot_general(h2c, w3_ref[...], (((0,), (1,)), ((), ())),
                        preferred_element_type=jnp.float32)
    o_ref[...] = (q + b3_ref[...]).astype(o_ref.dtype)


def dqn_forward(x, params, *, max_tile_b=4096):
    """x: (B, state_size), f32 (or bf16 if the replay buffer stores bf16 states).

    Returns (B, action_size) f32 Q-values.
    """
    w1, b1 = params["w1"], params["b1"]
    w2, b2 = params["w2"], params["b2"]
    w3, b3 = params["w3"], params["b3"]

    B, state_size = x.shape
    hidden = w1.shape[0]
    action_size = w3.shape[0]

    cdt = x.dtype  # no wrapper cast of x (would be an extra HBM pass)

    # --- batch tiling: big lane-aligned tiles; >=2 grid steps when B > 128 (v7x) ---
    max_tile_b = max(128, _round_up(max_tile_b, 128))
    b128 = _round_up(max(B, 1), 128)
    if b128 > 128:
        n_steps = max(2, pl.cdiv(b128, max_tile_b))
        tile_b = _round_up(pl.cdiv(b128, n_steps), 128)
    else:
        tile_b = 128
    b_pad = _round_up(max(B, 1), tile_b)
    grid = (b_pad // tile_b,)

    x_in = x
    if b_pad != B:
        # Single preprocessing op; padded rows yield bias-only Q-values sliced off below.
        x_in = jnp.pad(x, ((0, b_pad - B), (0, 0)))

    # Casting the ~7 KB of weights to the state dtype is negligible; biases stay f32.
    w1c = w1.astype(cdt)
    w2c = w2.astype(cdt)
    w3c = w3.astype(cdt)

    const = lambda i: (0, 0)  # weights/biases: same block every step -> VMEM resident

    out = pl.pallas_call(
        dqn_kernel,
        out_shape=jax.ShapeDtypeStruct((b_pad, action_size), jnp.float32),
        grid=grid,
        in_specs=[
            pl.BlockSpec((tile_b, state_size), lambda i: (i, 0)),  # x tile (pipelined)
            pl.BlockSpec((hidden, state_size), const),             # w1
            pl.BlockSpec((hidden, 1), const),                      # b1
            pl.BlockSpec((hidden, hidden), const),                 # w2
            pl.BlockSpec((hidden, 1), const),                      # b2
            pl.BlockSpec((action_size, hidden), const),            # w3
            pl.BlockSpec((1, action_size), const),                 # b3
        ],
        out_specs=pl.BlockSpec((tile_b, action_size), lambda i: (i, 0)),
        compiler_params=pltpu.CompilerParams(
            dimension_semantics=("parallel",),   # megacore sharding on v7x
        ),
    )(x_in, w1c, b1, w2c, b2, w3c, b3)

    return out[:B]


def init_params(key, state_size, action_size, hidden=32):
    """Deterministic init mimicking nn.Linear default (uniform +-1/sqrt(fan_in)).

    Weights are PyTorch-native (out_features, in_features); b1/b2 are (hidden, 1)
    (lane-broadcast in the kernel) and b3 is (1, action_size) (sublane-broadcast).
    """
    ks = jax.random.split(key, 6)

    def lin(kw, kb, fan_in, fan_out, bias_shape):
        bound = 1.0 / jnp.sqrt(jnp.float32(fan_in))
        w = jax.random.uniform(kw, (fan_out, fan_in), jnp.float32, -bound, bound)
        b = jax.random.uniform(kb, bias_shape, jnp.float32, -bound, bound)
        return w, b

    w1, b1 = lin(ks[0], ks[1], state_size, hidden, (hidden, 1))
    w2, b2 = lin(ks[2], ks[3], hidden, hidden, (hidden, 1))
    w3, b3 = lin(ks[4], ks[5], hidden, action_size, (1, action_size))
    return {"w1": w1, "b1": b1, "w2": w2, "b2": b2, "w3": w3, "b3": b3}


def dqn_reference(x, p):
    h1 = jnp.maximum(x @ p["w1"].T + p["b1"][:, 0], 0.0)
    h2 = jnp.maximum(h1 @ p["w2"].T + p["b2"][:, 0], 0.0)
    return h2 @ p["w3"].T + p["b3"][0]


if __name__ == "__main__":
    key = jax.random.PRNGKey(0)
    k_params, k_x1, k_x2 = jax.random.split(key, 3)

    state_size, action_size = 16, 4
    params = init_params(k_params, state_size, action_size)

    # Small batch: single 128-lane tile, grid=(1,).
    x_small = jax.random.normal(k_x1, (8, state_size), jnp.float32)
    out_small = jax.block_until_ready(dqn_forward(x_small, params))
    ref_small = dqn_reference(x_small, params)
    assert out_small.shape == (8, action_size)
    assert jnp.allclose(out_small, ref_small, atol=1e-5, rtol=1e-5)

    # Replay-batch path: B=300 -> two 256-wide tiles (exercises padding + 2-step grid).
    x_med = jax.random.normal(k_x2, (300, state_size), jnp.float32)
    out_med = jax.block_until_ready(dqn_forward(x_med, params))
    ref_med = dqn_reference(x_med, params)
    assert out_med.shape == (300, action_size)
    assert jnp.allclose(out_med, ref_med, atol=1e-5, rtol=1e-5)

    # bf16-stored-states path (only taken when the buffer already holds bf16 states).
    out_bf16 = jax.block_until_ready(dqn_forward(x_med.astype(jnp.bfloat16), params))
    assert out_bf16.shape == (300, action_size)
    assert jnp.allclose(out_bf16, ref_med, atol=5e-2, rtol=5e-2)

    print("KERNEL_OK")
</pallas_src>

<mosaic_0001>
module attributes {stable_mosaic.version = 11 : i64} {
  func.func @dqn_kernel(%arg0: i32, %arg1: memref<128x16xf32, #tpu.memory_space<vmem>>, %arg2: memref<32x16xf32, #tpu.memory_space<vmem>>, %arg3: memref<32x1xf32, #tpu.memory_space<vmem>>, %arg4: memref<32x32xf32, #tpu.memory_space<vmem>>, %arg5: memref<32x1xf32, #tpu.memory_space<vmem>>, %arg6: memref<4x32xf32, #tpu.memory_space<vmem>>, %arg7: memref<1x4xf32, #tpu.memory_space<vmem>>, %arg8: memref<128x4xf32, #tpu.memory_space<vmem>>) attributes {dimension_semantics = [#tpu.dimension_semantics<parallel>], iteration_bounds = array<i64: 1>, scalar_prefetch = 0 : i64, scratch_operands = 0 : i64, tpu.core_type = #tpu.core_type<tc>, window_params = [{transform_indices = @transform_0, window_bounds = array<i64: 128, 16>}, {pipeline_mode = #tpu.pipeline_mode<synchronous>, transform_indices = @transform_1, window_bounds = array<i64: 32, 16>}, {pipeline_mode = #tpu.pipeline_mode<synchronous>, transform_indices = @transform_2, window_bounds = array<i64: 32, 1>}, {pipeline_mode = #tpu.pipeline_mode<synchronous>, transform_indices = @transform_3, window_bounds = array<i64: 32, 32>}, {pipeline_mode = #tpu.pipeline_mode<synchronous>, transform_indices = @transform_4, window_bounds = array<i64: 32, 1>}, {pipeline_mode = #tpu.pipeline_mode<synchronous>, transform_indices = @transform_5, window_bounds = array<i64: 4, 32>}, {pipeline_mode = #tpu.pipeline_mode<synchronous>, transform_indices = @transform_6, window_bounds = array<i64: 1, 4>}, {transform_indices = @transform_7, window_bounds = array<i64: 128, 4>}]} {
    %c0 = arith.constant 0 : index
    %c0_0 = arith.constant 0 : index
    %0 = vector.load %arg1[%c0, %c0_0] : memref<128x16xf32, #tpu.memory_space<vmem>>, vector<128x16xf32>
    %c0_1 = arith.constant 0 : index
    %c0_2 = arith.constant 0 : index
    %1 = vector.load %arg2[%c0_1, %c0_2] : memref<32x16xf32, #tpu.memory_space<vmem>>, vector<32x16xf32>
    %cst = arith.constant dense<0.000000e+00> : vector<32x128xf32>
    %2 = tpu.matmul %1, %0, %cst {dimension_numbers = #tpu.dot_dimension_numbers<[1], [1], [0], [0], [0, 0, 1, 0], [], []>} : vector<32x16xf32>, vector<128x16xf32>, vector<32x128xf32> -> vector<32x128xf32>
    %c0_3 = arith.constant 0 : index
    %c0_4 = arith.constant 0 : index
    %3 = vector.load %arg3[%c0_3, %c0_4] : memref<32x1xf32, #tpu.memory_space<vmem>>, vector<32x1xf32>
    %4 = vector.broadcast %3 : vector<32x1xf32> to vector<32x128xf32>
    %5 = arith.addf %2, %4 : vector<32x128xf32>
    %cst_5 = arith.constant 0.000000e+00 : f32
    %6 = vector.broadcast %cst_5 : f32 to vector<32x128xf32>
    %7 = arith.maximumf %5, %6 : vector<32x128xf32>
    %c0_6 = arith.constant 0 : index
    %c0_7 = arith.constant 0 : index
    %8 = vector.load %arg4[%c0_6, %c0_7] : memref<32x32xf32, #tpu.memory_space<vmem>>, vector<32x32xf32>
    %cst_8 = arith.constant dense<0.000000e+00> : vector<32x128xf32>
    %9 = tpu.matmul %8, %7, %cst_8 {dimension_numbers = #tpu.dot_dimension_numbers<[1], [0], [0], [1], [0, 0, 1, 1], [], []>} : vector<32x32xf32>, vector<32x128xf32>, vector<32x128xf32> -> vector<32x128xf32>
    %c0_9 = arith.constant 0 : index
    %c0_10 = arith.constant 0 : index
    %10 = vector.load %arg5[%c0_9, %c0_10] : memref<32x1xf32, #tpu.memory_space<vmem>>, vector<32x1xf32>
    %11 = vector.broadcast %10 : vector<32x1xf32> to vector<32x128xf32>
    %12 = arith.addf %9, %11 : vector<32x128xf32>
    %cst_11 = arith.constant 0.000000e+00 : f32
    %13 = vector.broadcast %cst_11 : f32 to vector<32x128xf32>
    %14 = arith.maximumf %12, %13 : vector<32x128xf32>
    %c0_12 = arith.constant 0 : index
    %c0_13 = arith.constant 0 : index
    %15 = vector.load %arg6[%c0_12, %c0_13] : memref<4x32xf32, #tpu.memory_space<vmem>>, vector<4x32xf32>
    %cst_14 = arith.constant dense<0.000000e+00> : vector<128x4xf32>
    %16 = tpu.matmul %14, %15, %cst_14 {dimension_numbers = #tpu.dot_dimension_numbers<[0], [1], [1], [0], [0, 1, 1, 0], [], []>} : vector<32x128xf32>, vector<4x32xf32>, vector<128x4xf32> -> vector<128x4xf32>
    %c0_15 = arith.constant 0 : index
    %c0_16 = arith.constant 0 : index
    %17 = vector.load %arg7[%c0_15, %c0_16] : memref<1x4xf32, #tpu.memory_space<vmem>>, vector<1x4xf32>
    %18 = vector.broadcast %17 : vector<1x4xf32> to vector<128x4xf32>
    %19 = arith.addf %16, %18 : vector<128x4xf32>
    %c0_17 = arith.constant 0 : index
    %c0_18 = arith.constant 0 : index
    %20 = vector.load %arg8[%c0_17, %c0_18] : memref<128x4xf32, #tpu.memory_space<vmem>>, vector<128x4xf32>
    tpu.vector_store %arg8[%c0_17, %c0_18], %19 {strides = array<i32>} : memref<128x4xf32, #tpu.memory_space<vmem>>, vector<128x4xf32>,
    return
  }
  func.func @transform_0(%arg0: i32) -> (i32, i32) {
    %c0_i32 = arith.constant 0 : i32
    %c0_i32_0 = arith.constant 0 : i32
    return %arg0, %c0_i32 : i32, i32
  }
  func.func @transform_1(%arg0: i32) -> (i32, i32) {
    %c0_i32 = arith.constant 0 : i32
    %c0_i32_0 = arith.constant 0 : i32
    %c0_i32_1 = arith.constant 0 : i32
    return %c0_i32, %c0_i32_0 : i32, i32
  }
  func.func @transform_2(%arg0: i32) -> (i32, i32) {
    %c0_i32 = arith.constant 0 : i32
    %c0_i32_0 = arith.constant 0 : i32
    %c0_i32_1 = arith.constant 0 : i32
    return %c0_i32, %c0_i32_0 : i32, i32
  }
  func.func @transform_3(%arg0: i32) -> (i32, i32) {
    %c0_i32 = arith.constant 0 : i32
    %c0_i32_0 = arith.constant 0 : i32
    %c0_i32_1 = arith.constant 0 : i32
    return %c0_i32, %c0_i32_0 : i32, i32
  }
  func.func @transform_4(%arg0: i32) -> (i32, i32) {
    %c0_i32 = arith.constant 0 : i32
    %c0_i32_0 = arith.constant 0 : i32
    %c0_i32_1 = arith.constant 0 : i32
    return %c0_i32, %c0_i32_0 : i32, i32
  }
  func.func @transform_5(%arg0: i32) -> (i32, i32) {
    %c0_i32 = arith.constant 0 : i32
    %c0_i32_0 = arith.constant 0 : i32
    %c0_i32_1 = arith.constant 0 : i32
    return %c0_i32, %c0_i32_0 : i32, i32
  }
  func.func @transform_6(%arg0: i32) -> (i32, i32) {
    %c0_i32 = arith.constant 0 : i32
    %c0_i32_0 = arith.constant 0 : i32
    %c0_i32_1 = arith.constant 0 : i32
    return %c0_i32, %c0_i32_0 : i32, i32
  }
  func.func @transform_7(%arg0: i32) -> (i32, i32) {
    %c0_i32 = arith.constant 0 : i32
    %c0_i32_0 = arith.constant 0 : i32
    return %arg0, %c0_i32 : i32, i32
  }
}

</mosaic_0001>

<bundles_post_ra>
// kernel: tpu_custom_call.1
= control target key start
LH: loop header
LB: loop body
LE: loop exit
PB: predicated region body
PF: predicated region fallthrough
CT: control target
= control target key end

     0   :  { %vm70_vm0 = vcmask 130048   ;;  %v460_v10 = vmov 0   ;;  %vm192_vm1 = vcmask 261120   ;;  %vm391_vm2 = vcmask 31744   ;;  %s709_s0 = inlined_call_operand.vmem [shape: f32[128,16], index: 0, kind: input, shape index: {}]   ;;  %s710_s2 = inlined_call_operand.vmem [shape: f32[32,1], index: 2, kind: input, shape index: {}]   ;;  %s711_s4 = inlined_call_operand.vmem [shape: f32[32,1], index: 4, kind: input, shape index: {}]   ;;  %s712_s1 = inlined_call_operand.vmem [shape: f32[32,16], index: 1, kind: input, shape index: {}]   ;;  %s713_s3 = inlined_call_operand.vmem [shape: f32[32,32], index: 3, kind: input, shape index: {}]   ;;  %s714_s5 = inlined_call_operand.vmem [shape: f32[4,32], index: 5, kind: input, shape index: {}]   ;;  %s715_s6 = inlined_call_operand.vmem [shape: f32[1,4], index: 6, kind: input, shape index: {}]   ;;  %s716_s7 = inlined_call_operand.vmem [shape: f32[128,4], index: 7, kind: output, shape index: {}]  }
   0x1   :  { %v41_v0 = vld [vmem:[%s709_s0 + $0x78] sm:$0xff]  ;;  %v40_v1 = vld [vmem:[%s709_s0 + $0x70] sm:$0xff]  ;;  %v39_v2 = vld [vmem:[%s709_s0 + $0x68] sm:$0xff]  ;;  %457 = vset.pattern.permute.xlu1 %v460_v10  ;;  %456 = vset.pattern.permute.xlu0 %v460_v10 }
   0x2   :  { %412 = vmatpush.xpose.msk.msra.mxu0 %vm70_vm0, %v41_v0  ;;  %v38_v3 = vld [vmem:[%s709_s0 + $0x60] sm:$0xff]  ;;  %v37_v4 = vld [vmem:[%s709_s0 + $0x58] sm:$0xff]  ;;  %v36_v5 = vld [vmem:[%s709_s0 + $0x50] sm:$0xff]  ;;  %458 = vset.pattern.permute.xlu2 %v460_v10 }
   0x3   :  { %v35_v6 = vld [vmem:[%s709_s0 + $0x48] sm:$0xff]  ;;  %v34_v7 = vld [vmem:[%s709_s0 + $0x40] sm:$0xff]  ;;  %v33_v8 = vld [vmem:[%s709_s0 + $0x38] sm:$0xff] }
   0x4   :  { %v47_v9 = vld [vmem:[%s710_s2 + $0x8] sm:$0xff]  ;;  %v32_v11 = vld [vmem:[%s709_s0 + $0x30] sm:$0xff]  ;;  %v46_v13 = vld [vmem:[%s710_s2] sm:$0xff] }
   0x5   :  { %57 = vperm.xlu1 %457, %v47_v9   ;;  %v31_v12 = vld [vmem:[%s709_s0 + $0x28] sm:$0xff]  ;;  %v49_v14 = vld [vmem:[%s710_s2 + $0x18] sm:$0xff]  ;;  %v30_v15 = vld [vmem:[%s709_s0 + $0x20] sm:$0xff] }
   0x6   :  { %413 = vmatpush.xpose.msk.msra.mxu0 %vm70_vm0, %v40_v1  ;;  %67 = vperm.xlu0 %456, %v49_v14   ;;  %v29_v16 = vld [vmem:[%s709_s0 + $0x18] sm:$0xff]  ;;  %v48_v17 = vld [vmem:[%s710_s2 + $0x10] sm:$0xff]  ;;  %v27_v19 = vld [vmem:[%s709_s0 + $0x8] sm:$0xff] }
   0x7   :  { %v28_v18 = vld [vmem:[%s709_s0 + $0x10] sm:$0xff]  ;;  %v171_v21 = vld [vmem:[%s711_s4 + $0x18] sm:$0xff]  ;;  %v26_v22 = vld [vmem:[%s709_s0] sm:$0xff] }
   0x8   :  { %v170_v20 = vld [vmem:[%s711_s4 + $0x10] sm:$0xff]  ;;  %v42_v23 = vld [vmem:[%s712_s1] sm:$0xff]  ;;  %v43_v24 = vld [vmem:[%s712_s1 + $0x8] sm:$0xff] }
   0x9   :  { %v44_v25 = vld [vmem:[%s712_s1 + $0x10] sm:$0xff]  ;;  %v45_v26 = vld [vmem:[%s712_s1 + $0x18] sm:$0xff]  ;;  %v168_v39 = vld [vmem:[%s711_s4] sm:$0xff] }
   0xa   :  { %414 = vmatpush.xpose.msk.msra.mxu0 %vm70_vm0, %v39_v2  ;;  %174 = vperm.xlu2 %458, %v168_v39   ;;  %v164_v44 = vld [vmem:[%s713_s3] sm:$0xff]  ;;  %v169_v45 = vld [vmem:[%s711_s4 + $0x8] sm:$0xff]  ;;  %v166_v47 = vld [vmem:[%s713_s3 + $0x10] sm:$0xff] }
   0xb   :  { %v165_v46 = vld [vmem:[%s713_s3 + $0x8] sm:$0xff]  ;;  %v167_v48 = vld [vmem:[%s713_s3 + $0x18] sm:$0xff]  ;;  %v238_v49 = vld [vmem:[%s714_s5] sm:$0xf] }
   0xc   :  { %436 = vmatpush.xpose.msk.msra.mxu2 %vm192_vm1, %v238_v49  ;;  %453 = vmatpush.xpose.msk.msra.mxu3 %vm192_vm1, %v238_v49 }
   0xd   :  { %52 = vperm.xlu1 %457, %v46_v13  }
   0xe   :  { %415 = vmatpush.xpose.msk.msra.mxu0 %vm70_vm0, %v38_v3  ;;  %62 = vperm.xlu0 %456, %v48_v17  }
  0x12   :  { %416 = vmatpush.xpose.msk.msra.mxu0 %vm70_vm0, %v37_v4  ;;  %179 = vperm.xlu2 %458, %v169_v45  }
  0x15   :  { %189 = vperm.xlu1 %457, %v171_v21  }
  0x16   :  { %417 = vmatpush.xpose.msk.msra.mxu0 %vm70_vm0, %v36_v5  ;;  %184 = vperm.xlu0 %456, %v170_v20  }
  0x1a   :  { %418 = vmatpush.xpose.msk.msra.mxu0 %vm70_vm0, %v35_v6 }
  0x1e   :  { %419 = vmatpush.xpose.msk.msra.mxu0 %vm70_vm0, %v34_v7 }
  0x22   :  { %420 = vmatpush.xpose.msk.msra.mxu0 %vm70_vm0, %v33_v8 }
  0x26   :  { %421 = vmatpush.xpose.msk.msra.mxu0 %vm70_vm0, %v32_v11 }
  0x2a   :  { %422 = vmatpush.xpose.msk.msra.mxu0 %vm70_vm0, %v31_v12 }
  0x2e   :  { %423 = vmatpush.xpose.msk.msra.mxu0 %vm70_vm0, %v30_v15 }
  0x32   :  { %424 = vmatpush.xpose.msk.msra.mxu0 %vm70_vm0, %v29_v16 }
  0x36   :  { %425 = vmatpush.xpose.msk.msra.mxu0 %vm70_vm0, %v28_v18  ;;  %v459_v18 = vld [vmem:[%s715_s6] ss:$0 sm:$0xff] }
  0x3a   :  { %426 = vmatpush.xpose.msk.msra.mxu0 %vm70_vm0, %v27_v19 }
  0x3e   :  { %427 = vmatpush.xpose.msk.msra.mxu0 %vm70_vm0, %v26_v22 }
  0x41   :  { %428 = vmatmul.msk.f32.vlgmr.msra.gmra.mxu0 %vm70_vm0, %v42_v23 }
  0x49   :  { %429 = vmatmul.msk.f32.gmra.mxu0 %vm70_vm0, %v43_v24 }
  0x51   :  { %430 = vmatmul.msk.f32.gmra.mxu0 %vm70_vm0, %v44_v25 }
  0x59   :  { %431 = vmatmul.msk.f32.gmra.mxu0 %vm70_vm0, %v45_v26 }
  0x64   :  { %v175_v50 = vpop.permute.xlu2 %174 }
  0x6c   :  { %v180_v54 = vpop.permute.xlu2 %179 }
  0x77   :  { %v58_v30 = vpop.permute.xlu1 %57 }
  0x78   :  { %v68_v29 = vpop.permute.xlu0 %67 }
  0x7f   :  { %v53_v36 = vpop.permute.xlu1 %52 }
  0x80   :  { %v63_v32 = vpop.permute.xlu0 %62 }
  0x87   :  { %v190_v62 = vpop.permute.xlu1 %189 }
  0x88   :  { %v185_v58 = vpop.permute.xlu0 %184 }
  0xbe   :  { %v148_v27 = vpop.f32.mrf.mxu0 }
  0xbf   :  { %v149_v40 = vadd.f32 %v148_v27, %v53_v36 }
  0xc1   :  { %v160_v43 = vmax.f32 %v149_v40, 0.0 }
  0xc6   :  { %v151_v28 = vpop.f32.mrf.mxu0 }
  0xc7   :  { %v152_v37 = vadd.f32 %v151_v28, %v58_v30 }
  0xc9   :  { %v161_v42 = vmax.f32 %v152_v37, 0.0 }
  0xce   :  { %v154_v31 = vpop.f32.mrf.mxu0 }
  0xcf   :  { %v155_v34 = vadd.f32 %v154_v31, %v63_v32 }
  0xd1   :  { %v162_v41 = vmax.f32 %v155_v34, 0.0 }
  0xd6   :  { %v157_v33 = vpop.f32.mrf.mxu0 }
  0xd7   :  { %v158_v35 = vadd.f32 %v157_v33, %v68_v29 }
  0xd9   :  { %v163_v38 = vmax.f32 %v158_v35, 0.0 }
  0xdb   :  { %217 = vmatpush.msra.mxu1 %v163_v38 }
  0xdd   :  { %218 = vmatpush.msra.mxu1 %v162_v41 }
  0xdf   :  { %219 = vmatpush.msra.mxu1 %v161_v42 }
  0xe1   :  { %220 = vmatpush.msra.mxu1 %v160_v43 }
  0xe2   :  { %432 = vmatmul.msk.f32.vlgmr.msra.gmra.mxu1 %vm192_vm1, %v164_v44 }
  0xea   :  { %433 = vmatmul.msk.f32.gmra.mxu1 %vm192_vm1, %v165_v46 }
  0xf2   :  { %434 = vmatmul.msk.f32.gmra.mxu1 %vm192_vm1, %v166_v47 }
  0xfa   :  { %435 = vmatmul.msk.f32.gmra.mxu1 %vm192_vm1, %v167_v48 }
 0x15f   :  { %v222_v51 = vpop.f32.mrf.mxu1 }
 0x160   :  { %v223_v52 = vadd.f32 %v222_v51, %v175_v50 }
 0x162   :  { %v234_v53 = vmax.f32 %v223_v52, 0.0 }
 0x164   :  { %243 = vxpose.xlu2.b32.start [1/4] (short) %v234_v53, 128 }
 0x167   :  { %v225_v55 = vpop.f32.mrf.mxu1 }
 0x168   :  { %v226_v56 = vadd.f32 %v225_v55, %v180_v54 }
 0x16a   :  { %v235_v57 = vmax.f32 %v226_v56, 0.0 }
 0x16c   :  { %244 = vxpose.xlu2.b32.cont [2/4] (short) %v235_v57, 128 }
 0x16f   :  { %v228_v59 = vpop.f32.mrf.mxu1 }
 0x170   :  { %v229_v60 = vadd.f32 %v228_v59, %v185_v58 }
 0x172   :  { %v236_v61 = vmax.f32 %v229_v60, 0.0 }
 0x174   :  { %245 = vxpose.xlu2.b32.cont [3/4] (short) %v236_v61, 128 }
 0x177   :  { %v231_v63 = vpop.f32.mrf.mxu1 }
 0x178   :  { %v232_v0 = vadd.f32 %v231_v63, %v190_v62 }
 0x17a   :  { %v237_v1 = vmax.f32 %v232_v0, 0.0 }
 0x17c   :  { %246 = vxpose.xlu2.b32.end [4/4] (short) %v237_v1, 128 }
 0x1fd   :  { %v259_v2 = vpop.trf.xlu2 }
 0x1fe   :  { %437 = vmatmul.msk.f32.vlgmr.msra.gmra.mxu2 %vm192_vm1, %v259_v2 }
 0x205   :  { %v260_v3 = vpop.trf.xlu2 }
 0x206   :  { %438 = vmatmul.msk.f32.gmra.mxu2 %vm192_vm1, %v260_v3 }
 0x20d   :  { %v261_v4 = vpop.trf.xlu2 }
 0x20e   :  { %439 = vmatmul.msk.f32.gmra.mxu2 %vm192_vm1, %v261_v4 }
 0x215   :  { %v262_v5 = vpop.trf.xlu2 }
 0x216   :  { %440 = vmatmul.msk.f32.gmra.mxu2 %vm192_vm1, %v262_v5 }
 0x21d   :  { %v263_v6 = vpop.trf.xlu2 }
 0x21e   :  { %441 = vmatmul.msk.f32.gmra.mxu2 %vm192_vm1, %v263_v6 }
 0x225   :  { %v264_v7 = vpop.trf.xlu2 }
 0x226   :  { %442 = vmatmul.msk.f32.gmra.mxu2 %vm192_vm1, %v264_v7 }
 0x22d   :  { %v265_v8 = vpop.trf.xlu2 }
 0x22e   :  { %443 = vmatmul.msk.f32.gmra.mxu2 %vm192_vm1, %v265_v8 }
 0x235   :  { %v266_v9 = vpop.trf.xlu2 }
 0x236   :  { %444 = vmatmul.msk.f32.gmra.mxu2 %vm192_vm1, %v266_v9 }
 0x23d   :  { %v267_v10 = vpop.trf.xlu2 }
 0x23e   :  { %445 = vmatmul.msk.f32.vlgmr.msra.gmra.mxu3 %vm192_vm1, %v267_v10 }
 0x245   :  { %v268_v11 = vpop.trf.xlu2 }
 0x246   :  { %446 = vmatmul.msk.f32.gmra.mxu3 %vm192_vm1, %v268_v11 }
 0x24d   :  { %v269_v12 = vpop.trf.xlu2 }
 0x24e   :  { %447 = vmatmul.msk.f32.gmra.mxu3 %vm192_vm1, %v269_v12 }
 0x255   :  { %v270_v13 = vpop.trf.xlu2 }
 0x256   :  { %448 = vmatmul.msk.f32.gmra.mxu3 %vm192_vm1, %v270_v13 }
 0x25d   :  { %v271_v14 = vpop.trf.xlu2 }
 0x25e   :  { %449 = vmatmul.msk.f32.gmra.mxu3 %vm192_vm1, %v271_v14 }
 0x265   :  { %v272_v15 = vpop.trf.xlu2 }
 0x266   :  { %450 = vmatmul.msk.f32.gmra.mxu3 %vm192_vm1, %v272_v15 }
 0x26d   :  { %v273_v16 = vpop.trf.xlu2 }
 0x26e   :  { %451 = vmatmul.msk.f32.gmra.mxu3 %vm192_vm1, %v273_v16 }
 0x275   :  { %v274_v17 = vpop.trf.xlu2 }
 0x276   :  { %452 = vmatmul.msk.f32.gmra.mxu3 %vm192_vm1, %v274_v17 }
 0x281   :  { %v343_v19 = vpop.f32.mrf.mxu2 }
 0x282   :  { %v344_v20 = vadd.f32 %v459_v18, %v343_v19 }
 0x284   :  { %392 = vst.msk [vmem:[%s716_s7] sm:$0xff] %vm391_vm2, %v344_v20 }
 0x289   :  { %v346_v21 = vpop.f32.mrf.mxu2 }
 0x28a   :  { %v347_v22 = vadd.f32 %v459_v18, %v346_v21 }
 0x28c   :  { %393 = vst.msk [vmem:[%s716_s7 + $0x8] sm:$0xff] %vm391_vm2, %v347_v22 }
 0x291   :  { %v349_v23 = vpop.f32.mrf.mxu2 }
 0x292   :  { %v350_v24 = vadd.f32 %v459_v18, %v349_v23 }
 0x294   :  { %394 = vst.msk [vmem:[%s716_s7 + $0x10] sm:$0xff] %vm391_vm2, %v350_v24 }
 0x299   :  { %v352_v25 = vpop.f32.mrf.mxu2 }
 0x29a   :  { %v353_v26 = vadd.f32 %v459_v18, %v352_v25 }
 0x29c   :  { %395 = vst.msk [vmem:[%s716_s7 + $0x18] sm:$0xff] %vm391_vm2, %v353_v26 }
 0x2a1   :  { %v355_v27 = vpop.f32.mrf.mxu2 }
 0x2a2   :  { %v356_v28 = vadd.f32 %v459_v18, %v355_v27 }
 0x2a4   :  { %396 = vst.msk [vmem:[%s716_s7 + $0x20] sm:$0xff] %vm391_vm2, %v356_v28 }
 0x2a9   :  { %v358_v29 = vpop.f32.mrf.mxu2 }
 0x2aa   :  { %v359_v30 = vadd.f32 %v459_v18, %v358_v29 }
 0x2ac   :  { %397 = vst.msk [vmem:[%s716_s7 + $0x28] sm:$0xff] %vm391_vm2, %v359_v30 }
 0x2b1   :  { %v361_v31 = vpop.f32.mrf.mxu2 }
 0x2b2   :  { %v362_v32 = vadd.f32 %v459_v18, %v361_v31 }
 0x2b4   :  { %398 = vst.msk [vmem:[%s716_s7 + $0x30] sm:$0xff] %vm391_vm2, %v362_v32 }
 0x2b9   :  { %v364_v33 = vpop.f32.mrf.mxu2 }
 0x2ba   :  { %v365_v34 = vadd.f32 %v459_v18, %v364_v33 }
 0x2bc   :  { %399 = vst.msk [vmem:[%s716_s7 + $0x38] sm:$0xff] %vm391_vm2, %v365_v34 }
 0x2c1   :  { %v367_v35 = vpop.f32.mrf.mxu3 }
 0x2c2   :  { %v368_v36 = vadd.f32 %v459_v18, %v367_v35 }
 0x2c4   :  { %400 = vst.msk [vmem:[%s716_s7 + $0x40] sm:$0xff] %vm391_vm2, %v368_v36 }
 0x2c9   :  { %v370_v37 = vpop.f32.mrf.mxu3 }
 0x2ca   :  { %v371_v38 = vadd.f32 %v459_v18, %v370_v37 }
 0x2cc   :  { %401 = vst.msk [vmem:[%s716_s7 + $0x48] sm:$0xff] %vm391_vm2, %v371_v38 }
 0x2d1   :  { %v373_v39 = vpop.f32.mrf.mxu3 }
 0x2d2   :  { %v374_v40 = vadd.f32 %v459_v18, %v373_v39 }
 0x2d4   :  { %402 = vst.msk [vmem:[%s716_s7 + $0x50] sm:$0xff] %vm391_vm2, %v374_v40 }
 0x2d9   :  { %v376_v41 = vpop.f32.mrf.mxu3 }
 0x2da   :  { %v377_v42 = vadd.f32 %v459_v18, %v376_v41 }
 0x2dc   :  { %403 = vst.msk [vmem:[%s716_s7 + $0x58] sm:$0xff] %vm391_vm2, %v377_v42 }
 0x2e1   :  { %v379_v43 = vpop.f32.mrf.mxu3 }
 0x2e2   :  { %v380_v44 = vadd.f32 %v459_v18, %v379_v43 }
 0x2e4   :  { %404 = vst.msk [vmem:[%s716_s7 + $0x60] sm:$0xff] %vm391_vm2, %v380_v44 }
 0x2e9   :  { %v382_v45 = vpop.f32.mrf.mxu3 }
 0x2ea   :  { %v383_v46 = vadd.f32 %v459_v18, %v382_v45 }
 0x2ec   :  { %405 = vst.msk [vmem:[%s716_s7 + $0x68] sm:$0xff] %vm391_vm2, %v383_v46 }
 0x2f1   :  { %v385_v47 = vpop.f32.mrf.mxu3 }
 0x2f2   :  { %v386_v48 = vadd.f32 %v459_v18, %v385_v47 }
 0x2f4   :  { %406 = vst.msk [vmem:[%s716_s7 + $0x70] sm:$0xff] %vm391_vm2, %v386_v48 }
 0x2f9   :  { %v388_v49 = vpop.f32.mrf.mxu3 }
 0x2fa   :  { %v389_v50 = vadd.f32 %v459_v18, %v388_v49 }
 0x2fc   :  { %407 = vst.msk [vmem:[%s716_s7 + $0x78] sm:$0xff] %vm391_vm2, %v389_v50 }

</bundles_post_ra>
